<compile_context>
chip_gen: v5e
topology: v5e:2x2
jax: 0.10.0
libtpu: 0.0.40
codegen_flags: <defaults>
</compile_context>

<pallas_src>
import math

import jax
import jax.numpy as jnp
import numpy as np
from jax.experimental import pallas as pl
from jax.experimental.pallas import tpu as pltpu


_NEG_SENTINEL = np.float32(-1e9)   # softplus(-1e9) == 0 exactly -> padded rows/cols add 0


def _round_up(x: int, m: int) -> int:
    return (x + m - 1) // m * m


def _cst_dist_kernel(w_ref, aux_ref, out_ref, acc_ref):
    """One lane-block (channel block) of the fused constant-distance loss.

    w_ref   : (K_max, TC) f32 VMEM  raw conv-weight params, channels on lanes
    aux_ref : (2, TC)     f32 VMEM  row 0 = raw bias, row 1 = 1/sqrt(K_module + 1)
    out_ref : (1, 1)      f32 SMEM  scalar loss, written once at the last grid step
    acc_ref : (1, TC)     f32 VMEM  per-lane running sum of distances (carried scratch)
    """
    i = pl.program_id(0)

    @pl.when(i == 0)
    def _():
        acc_ref[...] = jnp.zeros_like(acc_ref)

    # BiSE reparameterization (softplus -> nonnegative weights / bias).  Lane-dense:
    # every vreg element is a real channel (modulo the final block's pad columns,
    # which contribute exactly 0 via the sentinel / inv=0 backstops).
    w = jax.nn.softplus(w_ref[...])                     # (K_max, TC)  EUP
    aux = aux_ref[...]                                  # (2, TC)
    b = jax.nn.softplus(aux[0:1, :])                    # (1, TC)  == d_on (softplus >= 0)
    inv = aux[1:2, :]                                   # (1, TC)

    wsum = jnp.sum(w, axis=0, keepdims=True)            # sublane reduce -> XLU slot
    d_off = jnp.maximum(wsum - b, 0.0) * inv            # distance to {B >= sum(W)}
    dist = jnp.minimum(b, d_off)                        # (1, TC)

    acc_ref[...] += dist                                # pure VALU; no scalar RMW per step

    @pl.when(i == pl.num_programs(0) - 1)
    def _():
        out_ref[0, 0] = jnp.sum(acc_ref[...])           # single cross-lane reduce at the end


class RegularizationProjConstant:
    """Packs all BiSE (weight, bias) params once (host-side numpy) and caches the
    pallas_call; __call__ ignores its activation args, like the PyTorch forward."""

    def __init__(self, bise_params, channel_block: int = 8192,
                 vmem_weight_budget_bytes: int = 6 << 20):
        mods = []
        k_max = 1
        for (w_raw, b_raw) in bise_params:
            w_np = np.asarray(w_raw, dtype=np.float32)
            b_np = np.asarray(b_raw, dtype=np.float32).reshape(-1)
            c_out = int(w_np.shape[0])
            k = int(np.prod(w_np.shape[1:])) if w_np.ndim > 1 else 1
            mods.append((w_np.reshape(c_out, k), b_np, k))
            k_max = max(k_max, k)

        c_total = sum(m[0].shape[0] for m in mods)
        self._empty = (c_total == 0)
        if self._empty:
            return

        # Lane-axis channel block: multiple of 128, capped by channel_block and by a VMEM
        # budget for the double-buffered weight slab (keeps v5e's 16 MiB scoped default
        # and v7x's 32 MiB scoped / 64 MiB physical comfortable).
        tc_cap = max(128, (vmem_weight_budget_bytes // (2 * 4 * k_max)) // 128 * 128)
        tc = max(128, min(_round_up(c_total, 128), channel_block, tc_cap))
        c_pad = _round_up(c_total, tc)
        num_blocks = c_pad // tc

        # ---- one-time host-side packing: (K_max, C_pad) weights + (2, C_pad) aux -------
        w_all = np.full((k_max, c_pad), _NEG_SENTINEL, np.float32)   # softplus -> 0 on pad
        aux_all = np.zeros((2, c_pad), np.float32)
        aux_all[0, :] = _NEG_SENTINEL                                # pad channels: b -> 0
        col = 0
        for (w2d, b_vec, k) in mods:
            c = w2d.shape[0]
            w_all[:k, col:col + c] = w2d.T                           # channels -> lanes
            aux_all[0, col:col + c] = b_vec
            aux_all[1, col:col + c] = 1.0 / math.sqrt(k + 1.0)
            col += c

        self._w_all = jnp.asarray(w_all)
        self._aux_all = jnp.asarray(aux_all)

        cost = pl.CostEstimate(
            flops=int(3 * k_max * c_pad + 8 * c_pad),
            transcendentals=int(2 * (k_max + 1) * c_pad),
            bytes_accessed=int(4 * ((k_max + 2) * c_pad + 1)),
        )

        self._call = pl.pallas_call(
            _cst_dist_kernel,
            out_shape=jax.ShapeDtypeStruct((1, 1), jnp.float32),
            grid_spec=pltpu.PrefetchScalarGridSpec(
                num_scalar_prefetch=0,
                grid=(num_blocks,),
                in_specs=[
                    # sublane dim = full array extent (exempt from the 8-divisibility rule)
                    pl.BlockSpec((k_max, tc), lambda i: (0, i)),
                    pl.BlockSpec((2, tc), lambda i: (0, i)),
                ],
                out_specs=pl.BlockSpec((1, 1), lambda i: (0, 0),
                                       memory_space=pltpu.MemorySpace.SMEM),
                scratch_shapes=[pltpu.VMEM((1, tc), jnp.float32)],
            ),
            # Scalar/lane accumulator is carried across channel blocks -> "arbitrary".
            compiler_params=pltpu.CompilerParams(dimension_semantics=("arbitrary",)),
            cost_estimate=cost,
        )

    def __call__(self, *unused_activations, **unused_kwargs):
        if self._empty:
            return jnp.float32(0.0)
        return self._call(self._w_all, self._aux_all)[0, 0]


def _reference(bise_params) -> jax.Array:
    """Pure-JAX reference of the same math (for the correctness check)."""
    loss = jnp.float32(0.0)
    for (w_raw, b_raw) in bise_params:
        c_out = w_raw.shape[0]
        k = int(np.prod(w_raw.shape[1:]))
        w = jax.nn.softplus(jnp.asarray(w_raw, jnp.float32).reshape(c_out, k))
        b = jax.nn.softplus(jnp.asarray(b_raw, jnp.float32).reshape(c_out))
        wsum = w.sum(-1)
        d_off = jnp.maximum(wsum - b, 0.0) / jnp.sqrt(jnp.float32(k + 1.0))
        loss = loss + jnp.minimum(b, d_off).sum()
    return loss


if __name__ == "__main__":
    key = jax.random.PRNGKey(0)
    k1, k2, k3, k4 = jax.random.split(key, 4)

    # Two synthetic BiSE modules (raw pre-softplus params; OIHW conv convention).
    bise_params = [
        (jax.random.normal(k1, (4, 1, 3, 3), jnp.float32),   # weights bise #1  (K = 9)
         jax.random.normal(k2, (4,), jnp.float32)),          # bias    bise #1
        (jax.random.normal(k3, (4, 4, 3, 3), jnp.float32),   # weights bise #2  (K = 36)
         jax.random.normal(k4, (4,), jnp.float32)),          # bias    bise #2
    ]

    # The real forward also receives activations, which it ignores (loss is param-only).
    x_dummy = jax.random.normal(key, (2, 4, 16, 16), jnp.float32)

    reg = RegularizationProjConstant(bise_params)   # packing + compile happen once here
    loss = jax.block_until_ready(reg(x_dummy))

    ref = jax.block_until_ready(_reference(bise_params))
    np.testing.assert_allclose(np.asarray(loss), np.asarray(ref), rtol=1e-5, atol=1e-5)

    print("KERNEL_OK")
</pallas_src>

<mosaic_0001>
module attributes {stable_mosaic.version = 11 : i64} {
  func.func @_cst_dist_kernel(%arg0: i32, %arg1: memref<36x128xf32, #tpu.memory_space<vmem>>, %arg2: memref<2x128xf32, #tpu.memory_space<vmem>>, %arg3: memref<1x1xf32, #tpu.memory_space<smem>>, %arg4: memref<1x128xf32, #tpu.memory_space<vmem>>) attributes {dimension_semantics = [#tpu.dimension_semantics<arbitrary>], iteration_bounds = array<i64: 1>, scalar_prefetch = 0 : i64, scratch_operands = 1 : i64, tpu.core_type = #tpu.core_type<tc>, window_params = [{transform_indices = @transform_0, window_bounds = array<i64: 36, 128>}, {transform_indices = @transform_1, window_bounds = array<i64: 2, 128>}, {transform_indices = @transform_2, window_bounds = array<i64: 1, 1>}]} {
    %c0_i32 = arith.constant 0 : i32
    %0 = arith.cmpi eq, %arg0, %c0_i32 : i32
    %1 = arith.extui %0 : i1 to i32
    %c0_i32_0 = arith.constant 0 : i32
    %2 = arith.cmpi ne, %1, %c0_i32_0 : i32
    scf.if %2 {
      %cst_15 = arith.constant 0.000000e+00 : f32
      %48 = vector.broadcast %cst_15 : f32 to vector<1x128xf32>
      %c0_16 = arith.constant 0 : index
      %c0_17 = arith.constant 0 : index
      %49 = vector.load %arg4[%c0_16, %c0_17] : memref<1x128xf32, #tpu.memory_space<vmem>>, vector<1x128xf32>
      tpu.vector_store %arg4[%c0_16, %c0_17], %48 {strides = array<i32>} : memref<1x128xf32, #tpu.memory_space<vmem>>, vector<1x128xf32>,
    } else {
    }
    %c0 = arith.constant 0 : index
    %c0_1 = arith.constant 0 : index
    %3 = vector.load %arg1[%c0, %c0_1] : memref<36x128xf32, #tpu.memory_space<vmem>>, vector<36x128xf32>
    %cst = arith.constant 0.000000e+00 : f32
    %4 = vector.broadcast %cst : f32 to vector<36x128xf32>
    %5 = arith.maximumf %3, %4 : vector<36x128xf32>
    %6 = vector.broadcast %cst : f32 to vector<36x128xf32>
    %7 = arith.subf %3, %6 : vector<36x128xf32>
    %8 = arith.cmpf one, %7, %7 : vector<36x128xf32>
    %9 = vector.broadcast %cst : f32 to vector<36x128xf32>
    %10 = arith.addf %3, %9 : vector<36x128xf32>
    %11 = math.absf %7 : vector<36x128xf32>
    %cst_2 = arith.constant 0.000000e+00 : f32
    %12 = vector.broadcast %cst_2 : f32 to vector<36x128xf32>
    %13 = arith.subf %12, %11 : vector<36x128xf32>
    %14 = math.exp %13 : vector<36x128xf32>
    %15 = math.log1p %14 : vector<36x128xf32>
    %16 = arith.addf %5, %15 : vector<36x128xf32>
    %17 = arith.select %8, %10, %16 : vector<36x128xi1>, vector<36x128xf32>
    %c0_3 = arith.constant 0 : index
    %c0_4 = arith.constant 0 : index
    %18 = vector.load %arg2[%c0_3, %c0_4] : memref<2x128xf32, #tpu.memory_space<vmem>>, vector<2x128xf32>
    %19 = vector.extract_strided_slice %18 {offsets = [0, 0], sizes = [1, 128], strides = [1, 1]} : vector<2x128xf32> to vector<1x128xf32>
    %cst_5 = arith.constant 0.000000e+00 : f32
    %20 = vector.broadcast %cst_5 : f32 to vector<1x128xf32>
    %21 = arith.maximumf %19, %20 : vector<1x128xf32>
    %22 = vector.broadcast %cst_5 : f32 to vector<1x128xf32>
    %23 = arith.subf %19, %22 : vector<1x128xf32>
    %24 = arith.cmpf one, %23, %23 : vector<1x128xf32>
    %25 = vector.broadcast %cst_5 : f32 to vector<1x128xf32>
    %26 = arith.addf %19, %25 : vector<1x128xf32>
    %27 = math.absf %23 : vector<1x128xf32>
    %cst_6 = arith.constant 0.000000e+00 : f32
    %28 = vector.broadcast %cst_6 : f32 to vector<1x128xf32>
    %29 = arith.subf %28, %27 : vector<1x128xf32>
    %30 = math.exp %29 : vector<1x128xf32>
    %31 = math.log1p %30 : vector<1x128xf32>
    %32 = arith.addf %21, %31 : vector<1x128xf32>
    %33 = arith.select %24, %26, %32 : vector<1x128xi1>, vector<1x128xf32>
    %34 = vector.extract_strided_slice %18 {offsets = [1, 0], sizes = [1, 128], strides = [1, 1]} : vector<2x128xf32> to vector<1x128xf32>
    %cst_7 = arith.constant dense<0.000000e+00> : vector<128xf32>
    %35 = vector.multi_reduction <add>, %17, %cst_7 [0] : vector<36x128xf32> to vector<128xf32>
    %36 = vector.shape_cast %35 : vector<128xf32> to vector<1x128xf32>
    %37 = arith.subf %36, %33 : vector<1x128xf32>
    %cst_8 = arith.constant 0.000000e+00 : f32
    %38 = vector.broadcast %cst_8 : f32 to vector<1x128xf32>
    %39 = arith.maximumf %37, %38 : vector<1x128xf32>
    %40 = arith.mulf %39, %34 : vector<1x128xf32>
    %41 = arith.minimumf %33, %40 : vector<1x128xf32>
    %c0_9 = arith.constant 0 : index
    %c0_10 = arith.constant 0 : index
    %42 = vector.load %arg4[%c0_9, %c0_10] : memref<1x128xf32, #tpu.memory_space<vmem>>, vector<1x128xf32>
    %43 = arith.addf %42, %41 : vector<1x128xf32>
    %c0_11 = arith.constant 0 : index
    %c0_12 = arith.constant 0 : index
    %44 = vector.load %arg4[%c0_11, %c0_12] : memref<1x128xf32, #tpu.memory_space<vmem>>, vector<1x128xf32>
    tpu.vector_store %arg4[%c0_11, %c0_12], %43 {strides = array<i32>} : memref<1x128xf32, #tpu.memory_space<vmem>>, vector<1x128xf32>,
    %c0_i32_13 = arith.constant 0 : i32
    %45 = arith.cmpi eq, %arg0, %c0_i32_13 : i32
    %46 = arith.extui %45 : i1 to i32
    %c0_i32_14 = arith.constant 0 : i32
    %47 = arith.cmpi ne, %46, %c0_i32_14 : i32
    scf.if %47 {
      %c0_15 = arith.constant 0 : index
      %c0_16 = arith.constant 0 : index
      %48 = vector.load %arg4[%c0_15, %c0_16] : memref<1x128xf32, #tpu.memory_space<vmem>>, vector<1x128xf32>
      %49 = vector.shape_cast %48 : vector<1x128xf32> to vector<1x1x128xf32>
      %cst_17 = arith.constant dense<0.000000e+00> : vector<1xf32>
      %50 = vector.multi_reduction <add>, %49, %cst_17 [1, 2] : vector<1x1x128xf32> to vector<1xf32>
      %51 = vector.shape_cast %50 : vector<1xf32> to vector<1x1x1xf32>
      %52 = vector.extract %51[0, 0, 0] : f32 from vector<1x1x1xf32>
      %c0_18 = arith.constant 0 : index
      %c0_19 = arith.constant 0 : index
      %53 = memref.load %arg3[%c0_18, %c0_19] : memref<1x1xf32, #tpu.memory_space<smem>>
      memref.store %52, %arg3[%c0_18, %c0_19] : memref<1x1xf32, #tpu.memory_space<smem>>
    } else {
    }
    return
  }
  func.func @transform_0(%arg0: i32) -> (i32, i32) {
    %c0_i32 = arith.constant 0 : i32
    %c0_i32_0 = arith.constant 0 : i32
    return %c0_i32, %arg0 : i32, i32
  }
  func.func @transform_1(%arg0: i32) -> (i32, i32) {
    %c0_i32 = arith.constant 0 : i32
    %c0_i32_0 = arith.constant 0 : i32
    return %c0_i32, %arg0 : i32, i32
  }
  func.func @transform_2(%arg0: i32) -> (i32, i32) {
    %c0_i32 = arith.constant 0 : i32
    %c0_i32_0 = arith.constant 0 : i32
    %c0_i32_1 = arith.constant 0 : i32
    return %c0_i32, %c0_i32_0 : i32, i32
  }
}

</mosaic_0001>

<bundles_post_ra>
// kernel: tpu_custom_call.1
= control target key start
LH: loop header
LB: loop body
LE: loop exit
PB: predicated region body
PF: predicated region fallthrough
CT: control target
= control target key end

     0   :  { %7 = vsyncpa [#allocation4], 0  ;;  %s427_s0 = inlined_call_operand.hbm [shape: f32[36,128], index: 0, kind: input, shape index: {}]   ;;  %s428_s1 = inlined_call_operand.hbm [shape: f32[2,128], index: 1, kind: input, shape index: {}]   ;;  %s429_s2 = inlined_call_operand.hbm [shape: f32[1,1], index: 2, kind: output, shape index: {}]  }
   0x1   :  { %8 = vsyncpa [#allocation7], 0 }
   0x2   :  { %9 = vsyncpa [#allocation5], 0  ;;  %s14_s11 = sshll.u32 %s427_s0, 4  ;;  %s315_s12 = smov [#allocation3]   ;;  %s15_s11 = int_to_ptr.hbm [resolvable:$true] %s14_s11 }
   0x3   :  { %s16_s13 = sshll.u32 %s315_s12, 4  ;;  %s28_s16 = sshll.u32 %s428_s1, 4  ;;  %s17_s13 = int_to_ptr.vmem [resolvable:$true] %s16_s13  ;;  %s29_s16 = int_to_ptr.hbm [resolvable:$true] %s28_s16 }
   0x4   :  { %s316_s17 = smov 128   ;;  %s317_s18 = smov 8  }
   0x5   :  { %22 = dma.hbm_to_vmem [thread:$0]  %s15_s11, 640, %s17_s13, [#allocation4], %s316_s17, %s316_s17, %s317_s18  }
   0x6   :  { %s318_s19 = smov [#allocation6]  }
   0x7   :  { %s30_s20 = sshll.u32 %s318_s19, 4  ;;  %s31_s20 = int_to_ptr.vmem [resolvable:$true] %s30_s20 }
   0x8   :  { %33 = dma.hbm_to_vmem [thread:$0]  %s29_s16, 32, %s31_s20, [#allocation7]  }
   0x9   :  { %309 = dma.done.wait [#allocation4], 640  }
   0xa   :  { %310 = vsyncadd [#allocation4], 4294966656 }
   0xb   :  { %311 = dma.done.wait [#allocation7], 32  }
   0xc   :  { %312 = vsyncadd [#allocation7], 4294967264  ;;  %v319_v0 = vmov 0.0   ;;  %v342_v1 = vld [vmem:[#allocation3] sm:$0xff]  ;;  %v344_v2 = vld [vmem:[#allocation3 + $0x8] sm:$0xff]  ;;  %vm164_vm10 = vcmask 1043456  }
   0xd   :  { %46 = vst [vmem:[#allocation2] sm:$0x1] %v319_v0  ;;  %v346_v3 = vld [vmem:[#allocation3 + $0x10] sm:$0xff]  ;;  %v348_v4 = vld [vmem:[#allocation3 + $0x18] sm:$0xff]  ;;  %v350_v5 = vld [vmem:[#allocation3 + $0x20] sm:$0xf]  ;;  %vm57_vm0 = vcmp.ne.f32.partialorder %v342_v1, %v342_v1  ;;  %vm58_vm3 = vcmp.ne.f32.partialorder %v344_v2, %v344_v2 }
   0xe   :  { %v352_v6 = vld [vmem:[#allocation6] sm:$0x3]  ;;  %v67_v7 = vand.u32 2147483647, %v342_v1  ;;  %v68_v8 = vand.u32 2147483647, %v344_v2  ;;  %vm59_vm5 = vcmp.ne.f32.partialorder %v346_v3, %v346_v3  ;;  %vm60_vm8 = vcmp.ne.f32.partialorder %v348_v4, %v348_v4 }
   0xf   :  { %v69_v9 = vand.u32 2147483647, %v346_v3  ;;  %v70_v10 = vand.u32 2147483647, %v348_v4  ;;  %v71_v11 = vand.u32 2147483647, %v350_v5  ;;  %vm61_vm9 = vcmp.ne.f32.partialorder %v350_v5, %v350_v5 }
  0x10   :  { %v72_v12 = vsub.f32 0.0, %v67_v7  ;;  %v73_v13 = vsub.f32 0.0, %v68_v8  ;;  %v146_v14 = vand.u32 2147483647, %v352_v6  ;;  %v52_v30 = vmax.f32 %v342_v1, 0.0  ;;  %s205_s21 = sshll.u32 %s429_s2, 4  ;;  %s206_s21 = int_to_ptr.hbm [resolvable:$true] %s205_s21 }
  0x11   :  { %v74_v15 = vsub.f32 0.0, %v69_v9  ;;  %v75_v16 = vsub.f32 0.0, %v70_v10  ;;  %v76_v17 = vsub.f32 0.0, %v71_v11  ;;  %v53_v34 = vmax.f32 %v344_v2, 0.0  ;;  %s320_s23 = smov [#allocation8]  }
  0x12   :  { %v77_v18 = vmul.f32 1.442695, %v72_v12  ;;  %v79_v19 = vmul.f32 1.442695, %v73_v13  ;;  %v147_v22 = vsub.f32 0.0, %v146_v14  ;;  %v54_v35 = vmax.f32 %v346_v3, 0.0 }
  0x13   :  { %v81_v20 = vmul.f32 1.442695, %v74_v15  ;;  %v83_v21 = vmul.f32 1.442695, %v75_v16  ;;  %v85_v23 = vmul.f32 1.442695, %v76_v17  ;;  %vm144_vm12 = vcmp.ne.f32.partialorder %v352_v6, %v352_v6 }
  0x14   :  { %225 = vpow2.f32 %v77_v18  ;;  %v148_v24 = vmul.f32 1.442695, %v147_v22  ;;  %v55_v43 = vmax.f32 %v348_v4, 0.0  ;;  %v56_v51 = vmax.f32 %v350_v5, 0.0  ;;  %v180_v53 = vld [vmem:[#allocation2] sm:$0x1] }
  0x15   :  { %227 = vpow2.f32 %v79_v19  ;;  %vm187_vm13 = vcmask 1040384  }
  0x16   :  { %229 = vpow2.f32 %v81_v20 }
  0x17   :  { %231 = vpow2.f32 %v83_v21 }
  0x18   :  { %233 = vpow2.f32 %v85_v23 }
  0x19   :  { %235 = vpow2.f32 %v148_v24 }
  0x1a   :  { %v226_v25 = vpop.eup %225 }
  0x1b   :  { %v228_v26 = vpop.eup %227  ;;  %v87_v27 = vadd.f32 1.0, %v226_v25  ;;  %v90_v28 = vmul.f32 -0.5, %v226_v25  ;;  %v93_v39 = vand.u32 2147483647, %v226_v25 }
  0x1c   :  { %v230_v29 = vpop.eup %229  ;;  %v96_v31 = vadd.f32 1.0, %v228_v26  ;;  %v99_v32 = vmul.f32 -0.5, %v228_v26  ;;  %v102_v44 = vand.u32 2147483647, %v228_v26 }
  0x1d   :  { %v232_v33 = vpop.eup %231  ;;  %237 = vlog2.f32 %v87_v27  ;;  %v105_v36 = vadd.f32 1.0, %v230_v29  ;;  %v91_v38 = vadd.f32 1.0, %v90_v28  ;;  %v108_v40 = vmul.f32 -0.5, %v230_v29 }
  0x1e   :  { %v234_v37 = vpop.eup %233  ;;  %239 = vlog2.f32 %v96_v31  ;;  %v100_v41 = vadd.f32 1.0, %v99_v32  ;;  %v114_v42 = vadd.f32 1.0, %v232_v33  ;;  %v117_v46 = vmul.f32 -0.5, %v232_v33 }
  0x1f   :  { %241 = vlog2.f32 %v105_v36  ;;  %v109_v45 = vadd.f32 1.0, %v108_v40  ;;  %v366_v47 = vpop.eup %235  ;;  %v111_v48 = vand.u32 2147483647, %v230_v29  ;;  %v123_v49 = vadd.f32 1.0, %v234_v37 }
  0x20   :  { %243 = vlog2.f32 %v114_v42  ;;  %v126_v50 = vmul.f32 -0.5, %v234_v37  ;;  %v92_v52 = vmul.f32 %v226_v25, %v91_v38  ;;  %vm369_vm1 = vcmp.lt.f32.partialorder %v93_v39, 0.0004427343 }
  0x21   :  { %v118_v54 = vadd.f32 1.0, %v117_v46  ;;  %v101_v56 = vmul.f32 %v228_v26, %v100_v41  ;;  %v120_v57 = vand.u32 2147483647, %v232_v33  ;;  %245 = vlog2.f32 %v123_v49 }
  0x22   :  { %v127_v58 = vadd.f32 1.0, %v126_v50  ;;  %vm373_vm2 = vcmp.lt.f32.partialorder %v102_v44, 0.0004427343  ;;  %v110_v62 = vmul.f32 %v230_v29, %v109_v45  ;;  %v150_v63 = vadd.f32 1.0, %v366_v47 }
  0x23   :  { %v238_v55 = vpop.eup %237  ;;  %vm380_vm4 = vcmp.lt.f32.partialorder %v111_v48, 0.0004427343  ;;  %v129_v9 = vand.u32 2147483647, %v234_v37  ;;  %v119_v12 = vmul.f32 %v232_v33, %v118_v54  ;;  %vm390_vm6 = vcmp.lt.f32.partialorder %v120_v57, 0.0004427343 }
  0x24   :  { %v240_v59 = vpop.eup %239  ;;  %v89_v60 = vmul.f32 0.6931472, %v238_v55  ;;  %v128_v16 = vmul.f32 %v234_v37, %v127_v58  ;;  %247 = vlog2.f32 %v150_v63  ;;  %v153_v24 = vmul.f32 -0.5, %v366_v47 }
  0x25   :  { %v242_v0 = vpop.eup %241  ;;  %v98_v7 = vmul.f32 0.6931472, %v240_v59  ;;  %vm130_vm7 = vcmp.lt.f32.partialorder %v129_v9, 0.0004427343  ;;  %v143_v42 = vmax.f32 %v352_v6, 0.0 }
  0x26   :  { %v95_v10 = vsel %vm369_vm1, %v92_v52, %v89_v60  ;;  %v107_v11 = vmul.f32 0.6931472, %v242_v0  ;;  %v244_v13 = vpop.eup %243  ;;  %v154_v33 = vadd.f32 1.0, %v153_v24 }
  0x27   :  { %v104_v14 = vsel %vm373_vm2, %v101_v56, %v98_v7  ;;  %v132_v17 = vadd.f32 %v95_v10, %v52_v30  ;;  %v116_v19 = vmul.f32 0.6931472, %v244_v13  ;;  %v246_v21 = vpop.eup %245 }
  0x28   :  { %v113_v18 = vsel %vm380_vm4, %v110_v62, %v107_v11  ;;  %v133_v20 = vadd.f32 %v104_v14, %v53_v34  ;;  %v125_v26 = vmul.f32 0.6931472, %v246_v21 }
  0x29   :  { %v134_v22 = vadd.f32 %v113_v18, %v54_v35  ;;  %v137_v23 = vsel %vm57_vm0, %v342_v1, %v132_v17  ;;  %v122_v25 = vsel %vm390_vm6, %v119_v12, %v116_v19 }
  0x2a   :  { %v138_v27 = vsel %vm58_vm3, %v344_v2, %v133_v20  ;;  %v135_v28 = vadd.f32 %v122_v25, %v55_v43  ;;  %v131_v30 = vsel %vm130_vm7, %v128_v16, %v125_v26  ;;  %v248_v35 = vpop.eup %247  ;;  %v156_v2 = vand.u32 2147483647, %v366_v47 }
  0x2b   :  { %v139_v1 = vsel %vm59_vm5, %v346_v3, %v134_v22  ;;  %v161_v29 = vadd.f32 %v138_v27, %v137_v23  ;;  %v136_v31 = vadd.f32 %v131_v30, %v56_v51  ;;  %v152_v39 = vmul.f32 0.6931472, %v248_v35 }
  0x2c   :  { %v140_v32 = vsel %vm60_vm8, %v348_v4, %v135_v28  ;;  %v155_v3 = vmul.f32 %v366_v47, %v154_v33  ;;  %vm157_vm11 = vcmp.lt.f32.partialorder %v156_v2, 0.0004427343  ;;  %v176_v47 = vrot.slane %v352_v6, 1 }
  0x2d   :  { %v162_v34 = vadd.f32 %v161_v29, %v139_v1  ;;  %v141_v36 = vsel %vm61_vm9, %v350_v5, %v136_v31 }
  0x2e   :  { %v165_v38 = vsel %vm164_vm10, %v141_v36, 0.0  ;;  %v158_v43 = vsel %vm157_vm11, %v155_v3, %v152_v39 }
  0x2f   :  { %v163_v37 = vadd.f32 %v162_v34, %v140_v32  ;;  %v159_v45 = vadd.f32 %v158_v43, %v143_v42 }
  0x31   :  { %v166_v40 = vadd.f32 %v165_v38, %v163_v37  ;;  %v160_v5 = vsel %vm144_vm12, %v352_v6, %v159_v45 }
  0x33   :  { %v167_v41 = vrot.slane %v166_v40, 4 }
  0x35   :  { %v168_v44 = vadd.f32 %v167_v41, %v166_v40 }
  0x37   :  { %v169_v4 = vrot.slane %v168_v44, 2 }
  0x39   :  { %v170_v46 = vadd.f32 %v169_v4, %v168_v44 }
  0x3b   :  { %v171_v48 = vrot.slane %v170_v46, 1 }
  0x3d   :  { %v172_v49 = vadd.f32 %v171_v48, %v170_v46 }
  0x3f   :  { %v173_v50 = vsub.f32 %v172_v49, %v160_v5 }
  0x41   :  { %v174_v51 = vmax.f32 %v173_v50, 0.0 }
  0x43   :  { %v178_v52 = vmul.f32 %v176_v47, %v174_v51 }
  0x45   :  { %v179_v54 = vmin.f32 %v160_v5, %v178_v52 }
  0x47   :  { %v181_v55 = vadd.f32 %v180_v53, %v179_v54 }
  0x49   :  { %182 = vst [vmem:[#allocation2] sm:$0x1] %v181_v55 }
  0x50   :  { %v186_v56 = vld [vmem:[#allocation2] sm:$0x1] }
  0x51   :  { %v188_v57 = vsel %vm187_vm13, %v186_v56, 0.0 }
  0x52   :  { %189 = vadd.xlane.f32.xlu0 %v188_v57 }
  0xc5   :  { %v190_v58 = vpop.xlane.xlu0 %189 }
  0xc6   :  { %v191_v59 = vrot.slane %v190_v58, 4 }
  0xc8   :  { %v192_v60 = vadd.f32 %v191_v59, %v190_v58 }
  0xca   :  { %v193_v61 = vrot.slane %v192_v60, 2 }
  0xcc   :  { %v194_v62 = vadd.f32 %v193_v61, %v192_v60 }
  0xce   :  { %v195_v63 = vrot.slane %v194_v62, 1 }
  0xd0   :  { %v196_v0 = vadd.f32 %v195_v63, %v194_v62 }
  0xd2   :  { %217 = vpush %v196_v0 }
 0x103   :  { %s218_s22 = spop %217 }
 0x104   :  { %199 = sst [smem:[#allocation8]] %s218_s22 }
 0x105   :  { %208 = dma.smem_to_hbm %s320_s23, 16, %s206_s21, [#allocation5]  }
 0x106   :  { %313 = dma.done.wait [#allocation5], 16  }
 0x107   :  { %314 = vsyncadd [#allocation5], 4294967280 }
 0x108   :  { %213 = sfence }
 0x109   :  { %214 = vsyncpa [#allocation4], 1 }
 0x10a   :  { %215 = vsyncpa [#allocation7], 1 }
 0x10b   :  { %216 = vsyncpa [#allocation5], 1 }

</bundles_post_ra>
